<compile_context>
chip_gen: v5e
topology: v5e:2x2
jax: 0.10.0
libtpu: 0.0.40
codegen_flags: <defaults>
</compile_context>

<pallas_src>
import functools

import jax
import jax.numpy as jnp
from jax.experimental import pallas as pl
from jax.experimental.pallas import tpu as pltpu


# --------------------------------------------------------------------------
# Kernel body: the whole MLP fused.  refs = (x, w0, b0, ..., w_{n-1}, b_{n-1}, o)
# Matches MLP.forward: first Linear has NO activation, each middle Linear is
# followed by Tanh, the final Linear has NO activation.
# --------------------------------------------------------------------------
def _fused_mlp_kernel(*refs, n_layers, cast_to_bf16):
    x_ref = refs[0]
    o_ref = refs[1 + 2 * n_layers]

    h = x_ref[...]
    for idx in range(n_layers):
        w = refs[1 + 2 * idx][...]
        b = refs[2 + 2 * idx][...]
        lhs = h.astype(jnp.bfloat16) if cast_to_bf16 else h
        h = jnp.dot(lhs, w, preferred_element_type=jnp.float32) + b
        if 0 < idx < n_layers - 1:      # Tanh only after the middle Linears
            h = jnp.tanh(h)             # f32 tanh -> EUP slot on all gens
    o_ref[...] = h.astype(o_ref.dtype)


# --------------------------------------------------------------------------
# Wrapper helpers
# --------------------------------------------------------------------------
def _round_up(x, m):
    return ((x + m - 1) // m) * m


def _vmem_capacity_bytes():
    try:
        return int(pltpu.get_tpu_info().vmem_capacity_bytes)
    except Exception:
        return 64 << 20      # conservative: v7x per-TC VMEM


def _pad_params_lane_dense(params, *, lane=128, weight_dtype=None):
    """Zero-pad every weight's out-dim (and matching next-layer in-dim) and
    every bias to a multiple of `lane`.  The real input K is never padded."""
    padded = []
    prev = params[0][0].shape[0]                 # streamed input K, unpadded
    for (w, b) in params:
        din, dout = w.shape
        dout_p = _round_up(dout, lane)
        wd = weight_dtype if weight_dtype is not None else w.dtype
        w_p = jnp.zeros((prev, dout_p), wd).at[:din, :dout].set(w.astype(wd))
        b_p = jnp.zeros((1, dout_p), jnp.float32).at[:, :dout].set(
            b.astype(jnp.float32))
        padded.append((w_p, b_p))
        prev = dout_p
    return padded, prev                           # prev == final padded N


def fused_mlp(x, params, *, batch_tile=None, lane=128):
    """Run the whole MLP in one pallas_call.

    Small batches that fit comfortably in VMEM take a grid-less single-shot
    path (no pipeline machinery).  Everything else takes a batch-tiled grid
    whose axis is "parallel" (megacore sharding on v7x); weights/biases use a
    constant index_map so they stay VMEM-resident across tiles.
    """
    M, K = x.shape
    n = len(params)
    n_out = params[-1][0].shape[1]

    # bf16 MXU operands only pay off at realistic layer widths; gate on size.
    widest = max(max(w.shape) for w, _ in params)
    use_bf16 = (x.dtype == jnp.float32) and (widest >= 512)

    padded, n_pad = _pad_params_lane_dense(
        params, lane=lane, weight_dtype=jnp.bfloat16 if use_bf16 else None)
    flat = [a for wb in padded for a in wb]

    kernel = functools.partial(
        _fused_mlp_kernel, n_layers=n, cast_to_bf16=use_bf16)

    param_bytes = sum(int(a.size) * a.dtype.itemsize for a in flat)
    io_bytes = M * K * x.dtype.itemsize + M * n_pad * x.dtype.itemsize
    working_set = param_bytes + io_bytes
    vmem_cap = _vmem_capacity_bytes()

    # ---------------- grid-less single-shot path (small batches) ------------
    if batch_tile is None and M <= 1024 and working_set <= vmem_cap // 4:
        vmem_spec = pl.BlockSpec(memory_space=pltpu.MemorySpace.VMEM)
        out_pad = pl.pallas_call(
            kernel,
            out_shape=jax.ShapeDtypeStruct((M, n_pad), x.dtype),
            in_specs=[vmem_spec] * (1 + 2 * n),
            out_specs=vmem_spec,
            compiler_params=pltpu.CompilerParams(
                vmem_limit_bytes=int(min(max(32 << 20, 2 * working_set),
                                         56 << 20))),
        )(x, *flat)
        return out_pad[:, :n_out]

    # ---------------- batch-tiled path --------------------------------------
    if batch_tile is None:
        # Prefer big tiles (amortize ~0.35us/step), but keep >=4 grid steps
        # when M allows so v7x's 2 TCs each get >=2 pipelined steps.
        batch_tile = 2048
        while batch_tile > 128 and pl.cdiv(M, batch_tile) < 4:
            batch_tile //= 2
    batch_tile = max(8, (batch_tile // 8) * 8)   # f32 sublane multiple

    num_tiles = pl.cdiv(M, batch_tile)
    m_pad = num_tiles * batch_tile
    x_in = x if m_pad == M else jnp.pad(x, ((0, m_pad - M), (0, 0)))

    in_specs = [pl.BlockSpec((batch_tile, K), lambda i: (i, 0))]
    for w_p, b_p in padded:
        # Constant block index -> weights/biases stay resident across tiles.
        # TODO(synk): pipeline_mode=pl.Buffered(1) on these once weight
        # footprint matters on v7x's 64 MiB VMEM (negligible at these sizes).
        in_specs.append(pl.BlockSpec(w_p.shape, lambda i: (0, 0)))
        in_specs.append(pl.BlockSpec(b_p.shape, lambda i: (0, 0)))
    out_specs = pl.BlockSpec((batch_tile, n_pad), lambda i: (i, 0))

    out_pad = pl.pallas_call(
        kernel,
        out_shape=jax.ShapeDtypeStruct((m_pad, n_pad), x.dtype),
        grid=(num_tiles,),
        in_specs=in_specs,
        out_specs=out_specs,
        compiler_params=pltpu.CompilerParams(
            dimension_semantics=("parallel",)),
    )(x_in, *flat)
    return out_pad[:M, :n_out]


# --------------------------------------------------------------------------
# Parameter init (matches PyTorch nn.Linear defaults/shapes) and reference
# --------------------------------------------------------------------------
def init_mlp_params(key, input_size, output_size, hidden_layer_sizes):
    dims = [input_size] + list(hidden_layer_sizes) + [output_size]
    params = []
    for din, dout in zip(dims[:-1], dims[1:]):
        key, kw, kb = jax.random.split(key, 3)
        bound = 1.0 / jnp.sqrt(jnp.float32(din))
        w = jax.random.uniform(kw, (din, dout), jnp.float32, -bound, bound)
        b = jax.random.uniform(kb, (1, dout), jnp.float32, -bound, bound)
        params.append((w, b))
    return params


def mlp_reference(params, x):
    n = len(params)
    for idx, (w, b) in enumerate(params):
        x = x @ w + b
        if 0 < idx < n - 1:
            x = jnp.tanh(x)
    return x


# --------------------------------------------------------------------------
if __name__ == "__main__":
    key = jax.random.PRNGKey(0)
    input_size = 16            # stands in for X_train.shape[1]
    output_size = 1
    hidden_layer_sizes = [32, 32]

    kp, k1, k2, k3 = jax.random.split(key, 4)
    params = init_mlp_params(kp, input_size, output_size, hidden_layer_sizes)

    def check(x, out):
        ref = mlp_reference(params, x)
        assert out.shape == ref.shape
        err = float(jnp.max(jnp.abs(out - ref)))
        assert jnp.allclose(out, ref, atol=2e-2, rtol=2e-2), err

    # 1) Small batch -> grid-less single-shot path (whole net in VMEM).
    x_small = jax.random.normal(k1, (8, input_size), jnp.float32)
    check(x_small, jax.block_until_ready(fused_mlp(x_small, params)))

    # 2) Large, tile-divisible batch -> tiled path, 4 grid steps
    #    (>=2 steps per TC on v7x; sequential-but-cheap on v5e/v6e).
    x_big = jax.random.normal(k2, (4096, input_size), jnp.float32)
    check(x_big,
          jax.block_until_ready(fused_mlp(x_big, params, batch_tile=1024)))

    # 3) Non-divisible batch -> pl.cdiv grid + wrapper-side zero padding of M.
    x_odd = jax.random.normal(k3, (1000, input_size), jnp.float32)
    check(x_odd,
          jax.block_until_ready(fused_mlp(x_odd, params, batch_tile=512)))

    print("KERNEL_OK")
</pallas_src>

<mosaic_0001>
module attributes {stable_mosaic.version = 11 : i64} {
  func.func @_fused_mlp_kernel(%arg0: memref<8x16xf32, #tpu.memory_space<vmem>>, %arg1: memref<16x128xf32, #tpu.memory_space<vmem>>, %arg2: memref<1x128xf32, #tpu.memory_space<vmem>>, %arg3: memref<128x128xf32, #tpu.memory_space<vmem>>, %arg4: memref<1x128xf32, #tpu.memory_space<vmem>>, %arg5: memref<128x128xf32, #tpu.memory_space<vmem>>, %arg6: memref<1x128xf32, #tpu.memory_space<vmem>>, %arg7: memref<8x128xf32, #tpu.memory_space<vmem>>) attributes {dimension_semantics = [], scalar_prefetch = 0 : i64, scratch_operands = 0 : i64, tpu.core_type = #tpu.core_type<tc>} {
    %c0 = arith.constant 0 : index
    %c0_0 = arith.constant 0 : index
    %0 = vector.load %arg0[%c0, %c0_0] : memref<8x16xf32, #tpu.memory_space<vmem>>, vector<8x16xf32>
    %c0_1 = arith.constant 0 : index
    %c0_2 = arith.constant 0 : index
    %1 = vector.load %arg1[%c0_1, %c0_2] : memref<16x128xf32, #tpu.memory_space<vmem>>, vector<16x128xf32>
    %c0_3 = arith.constant 0 : index
    %c0_4 = arith.constant 0 : index
    %2 = vector.load %arg2[%c0_3, %c0_4] : memref<1x128xf32, #tpu.memory_space<vmem>>, vector<1x128xf32>
    %cst = arith.constant dense<0.000000e+00> : vector<8x128xf32>
    %3 = tpu.matmul %0, %1, %cst {dimension_numbers = #tpu.dot_dimension_numbers<[1], [0], [0], [1], [0, 0, 1, 1], [], []>} : vector<8x16xf32>, vector<16x128xf32>, vector<8x128xf32> -> vector<8x128xf32>
    %4 = vector.broadcast %2 : vector<1x128xf32> to vector<8x128xf32>
    %5 = arith.addf %3, %4 : vector<8x128xf32>
    %c0_5 = arith.constant 0 : index
    %c0_6 = arith.constant 0 : index
    %6 = vector.load %arg3[%c0_5, %c0_6] : memref<128x128xf32, #tpu.memory_space<vmem>>, vector<128x128xf32>
    %c0_7 = arith.constant 0 : index
    %c0_8 = arith.constant 0 : index
    %7 = vector.load %arg4[%c0_7, %c0_8] : memref<1x128xf32, #tpu.memory_space<vmem>>, vector<1x128xf32>
    %cst_9 = arith.constant dense<0.000000e+00> : vector<8x128xf32>
    %8 = tpu.matmul %5, %6, %cst_9 {dimension_numbers = #tpu.dot_dimension_numbers<[1], [0], [0], [1], [0, 0, 1, 1], [], []>} : vector<8x128xf32>, vector<128x128xf32>, vector<8x128xf32> -> vector<8x128xf32>
    %9 = vector.broadcast %7 : vector<1x128xf32> to vector<8x128xf32>
    %10 = arith.addf %8, %9 : vector<8x128xf32>
    %11 = math.tanh %10 : vector<8x128xf32>
    %c0_10 = arith.constant 0 : index
    %c0_11 = arith.constant 0 : index
    %12 = vector.load %arg5[%c0_10, %c0_11] : memref<128x128xf32, #tpu.memory_space<vmem>>, vector<128x128xf32>
    %c0_12 = arith.constant 0 : index
    %c0_13 = arith.constant 0 : index
    %13 = vector.load %arg6[%c0_12, %c0_13] : memref<1x128xf32, #tpu.memory_space<vmem>>, vector<1x128xf32>
    %cst_14 = arith.constant dense<0.000000e+00> : vector<8x128xf32>
    %14 = tpu.matmul %11, %12, %cst_14 {dimension_numbers = #tpu.dot_dimension_numbers<[1], [0], [0], [1], [0, 0, 1, 1], [], []>} : vector<8x128xf32>, vector<128x128xf32>, vector<8x128xf32> -> vector<8x128xf32>
    %15 = vector.broadcast %13 : vector<1x128xf32> to vector<8x128xf32>
    %16 = arith.addf %14, %15 : vector<8x128xf32>
    %c0_15 = arith.constant 0 : index
    %c0_16 = arith.constant 0 : index
    %17 = vector.load %arg7[%c0_15, %c0_16] : memref<8x128xf32, #tpu.memory_space<vmem>>, vector<8x128xf32>
    tpu.vector_store %arg7[%c0_15, %c0_16], %16 {strides = array<i32>} : memref<8x128xf32, #tpu.memory_space<vmem>>, vector<8x128xf32>,
    return
  }
}

</mosaic_0001>

<bundles_post_ra>
// kernel: tpu_custom_call.1
= control target key start
LH: loop header
LB: loop body
LE: loop exit
PB: predicated region body
PF: predicated region fallthrough
CT: control target
= control target key end

     0   :  { %12 = vsyncpa [#allocation3], 0  ;;  %s432_s0 = inlined_call_operand.hbm [shape: f32[8,16], index: 0, kind: input, shape index: {}]   ;;  %s433_s1 = inlined_call_operand.hbm [shape: f32[16,128], index: 1, kind: input, shape index: {}]   ;;  %s434_s2 = inlined_call_operand.vmem [shape: f32[1,128], index: 2, kind: input, shape index: {}]   ;;  %s435_s3 = inlined_call_operand.hbm [shape: f32[128,128], index: 3, kind: input, shape index: {}]   ;;  %s436_s4 = inlined_call_operand.vmem [shape: f32[1,128], index: 4, kind: input, shape index: {}]   ;;  %s437_s5 = inlined_call_operand.hbm [shape: f32[128,128], index: 5, kind: input, shape index: {}]   ;;  %s438_s6 = inlined_call_operand.vmem [shape: f32[1,128], index: 6, kind: input, shape index: {}]   ;;  %s439_s7 = inlined_call_operand.hbm [shape: f32[8,128], index: 7, kind: output, shape index: {}]  }
   0x1   :  { %13 = vsyncpa [#allocation6], 0 }
   0x2   :  { %14 = vsyncpa [#allocation9], 0  ;;  %s31_s26 = sshll.u32 %s433_s1, 4  ;;  %s32_s26 = int_to_ptr.hbm [resolvable:$true] %s31_s26 }
   0x3   :  { %15 = vsyncpa [#allocation4], 0  ;;  %s361_s27 = smov [#allocation5]   ;;  %s21_s8 = sshll.u32 %s432_s0, 4  ;;  %s22_s8 = int_to_ptr.hbm [resolvable:$true] %s21_s8 }
   0x4   :  { %s33_s28 = sshll.u32 %s361_s27, 4  ;;  %s362_s9 = smov 128   ;;  %s34_s28 = int_to_ptr.vmem [resolvable:$true] %s33_s28 }
   0x5   :  { %s363_s10 = smov 8   ;;  %s364_s11 = smov [#allocation2]  }
   0x6   :  { %39 = dma.hbm_to_vmem [thread:$0]  %s32_s26, 256, %s34_s28, [#allocation6], %s362_s9, %s362_s9, %s363_s10  }
   0x7   :  { %s23_s12 = sshll.u32 %s364_s11, 4  ;;  %s46_s15 = sshll.u32 %s435_s3, 4  ;;  %s24_s12 = int_to_ptr.vmem [resolvable:$true] %s23_s12  ;;  %s47_s15 = int_to_ptr.hbm [resolvable:$true] %s46_s15 }
   0x8   :  { %26 = dma.hbm_to_vmem [thread:$0]  %s22_s8, 128, %s24_s12, [#allocation3]  }
   0x9   :  { %s61_s17 = sshll.u32 %s437_s5, 4  ;;  %s365_s18 = smov [#allocation7]   ;;  %s62_s17 = int_to_ptr.hbm [resolvable:$true] %s61_s17 }
   0xa   :  { %s48_s19 = sshll.u32 %s365_s18, 4  ;;  %s366_s0 = smov [#allocation8]   ;;  %s49_s19 = int_to_ptr.vmem [resolvable:$true] %s48_s19 }
   0xb   :  { %54 = dma.hbm_to_vmem [thread:$0]  %s47_s15, 2048, %s49_s19, [#allocation6], %s362_s9, %s362_s9, %s363_s10  }
   0xc   :  { %s63_s20 = sshll.u32 %s366_s0, 4  ;;  %s64_s20 = int_to_ptr.vmem [resolvable:$true] %s63_s20 }
   0xd   :  { %69 = dma.hbm_to_vmem [thread:$0]  %s62_s17, 2048, %s64_s20, [#allocation9], %s362_s9, %s362_s9, %s363_s10  }
   0xe   :  { %353 = dma.done.wait [#allocation3], 128  }
   0xf   :  { %354 = vsyncadd [#allocation3], 4294967168 }
  0x10   :  { %355 = dma.done.wait [#allocation6], 2304  }
  0x11   :  { %356 = vsyncadd [#allocation6], 4294964992 }
  0x12   :  { %357 = dma.done.wait [#allocation9], 2048  }
  0x13   :  { %358 = vsyncadd [#allocation9], 4294965248  ;;  %v90_v0 = vld [vmem:[#allocation5 + $0x8] sm:$0xff]  ;;  %v89_v1 = vld [vmem:[#allocation5] sm:$0xff]  ;;  %vm95_vm0 = vcmask 130048   ;;  %s367_s24 = smov [#allocation10]  }
  0x14   :  { %113 = vmatpush.msra.mxu0 %v90_v0  ;;  %v88_v2 = vld [vmem:[#allocation2] sm:$0xff]  ;;  %v134_v3 = vld [vmem:[#allocation7 + $0x78] sm:$0xff]  ;;  %v133_v4 = vld [vmem:[#allocation7 + $0x70] sm:$0xff]  ;;  %s206_s25 = sshll.u32 %s367_s24, 4  ;;  %s208_s28 = sshll.u32 %s439_s7, 4  ;;  %s207_s25 = int_to_ptr.vmem [resolvable:$true] %s206_s25  ;;  %s209_s28 = int_to_ptr.hbm [resolvable:$true] %s208_s28 }
  0x15   :  { %139 = vmatpush.msra.mxu1 %v134_v3  ;;  %v132_v5 = vld [vmem:[#allocation7 + $0x68] sm:$0xff]  ;;  %v131_v6 = vld [vmem:[#allocation7 + $0x60] sm:$0xff]  ;;  %v130_v7 = vld [vmem:[#allocation7 + $0x58] sm:$0xff] }
  0x16   :  { %114 = vmatpush.msra.mxu0 %v89_v1  ;;  %v129_v8 = vld [vmem:[#allocation7 + $0x50] sm:$0xff]  ;;  %v128_v9 = vld [vmem:[#allocation7 + $0x48] sm:$0xff]  ;;  %v127_v10 = vld [vmem:[#allocation7 + $0x40] sm:$0xff] }
  0x17   :  { %220 = vmatmul.msk.f32.vlgmr.msra.gmra.mxu0 %vm95_vm0, %v88_v2  ;;  %140 = vmatpush.msra.mxu1 %v133_v4  ;;  %v126_v11 = vld [vmem:[#allocation7 + $0x38] sm:$0xff]  ;;  %v125_v12 = vld [vmem:[#allocation7 + $0x30] sm:$0xff]  ;;  %v124_v13 = vld [vmem:[#allocation7 + $0x28] sm:$0xff] }
  0x18   :  { %v123_v14 = vld [vmem:[#allocation7 + $0x20] sm:$0xff]  ;;  %v122_v15 = vld [vmem:[#allocation7 + $0x18] sm:$0xff]  ;;  %v121_v16 = vld [vmem:[#allocation7 + $0x10] sm:$0xff] }
  0x19   :  { %141 = vmatpush.msra.mxu1 %v132_v5  ;;  %v120_v17 = vld [vmem:[#allocation7 + $0x8] sm:$0xff]  ;;  %v119_v18 = vld [vmem:[#allocation7] sm:$0xff]  ;;  %v175_v19 = vld [vmem:[#allocation8 + $0x78] sm:$0xff] }
  0x1a   :  { %v174_v20 = vld [vmem:[#allocation8 + $0x70] sm:$0xff]  ;;  %180 = vmatpush.msra.mxu2 %v175_v19  ;;  %v173_v21 = vld [vmem:[#allocation8 + $0x68] sm:$0xff]  ;;  %v172_v22 = vld [vmem:[#allocation8 + $0x60] sm:$0xff] }
  0x1b   :  { %142 = vmatpush.msra.mxu1 %v131_v6  ;;  %v171_v23 = vld [vmem:[#allocation8 + $0x58] sm:$0xff]  ;;  %v170_v24 = vld [vmem:[#allocation8 + $0x50] sm:$0xff]  ;;  %v169_v25 = vld [vmem:[#allocation8 + $0x48] sm:$0xff] }
  0x1c   :  { %181 = vmatpush.msra.mxu2 %v174_v20  ;;  %v168_v26 = vld [vmem:[#allocation8 + $0x40] sm:$0xff]  ;;  %v167_v27 = vld [vmem:[#allocation8 + $0x38] sm:$0xff]  ;;  %v166_v28 = vld [vmem:[#allocation8 + $0x30] sm:$0xff] }
  0x1d   :  { %143 = vmatpush.msra.mxu1 %v130_v7  ;;  %v165_v29 = vld [vmem:[#allocation8 + $0x28] sm:$0xff]  ;;  %v164_v33 = vld [vmem:[#allocation8 + $0x20] sm:$0xff]  ;;  %v163_v34 = vld [vmem:[#allocation8 + $0x18] sm:$0xff] }
  0x1e   :  { %182 = vmatpush.msra.mxu2 %v173_v21  ;;  %v228_v30 = vld [vmem:[%s434_s2] ss:$0 sm:$0xff]  ;;  %v162_v35 = vld [vmem:[#allocation8 + $0x10] sm:$0xff]  ;;  %v160_v37 = vld [vmem:[#allocation8] sm:$0xff] }
  0x1f   :  { %144 = vmatpush.msra.mxu1 %v129_v8  ;;  %v161_v36 = vld [vmem:[#allocation8 + $0x8] sm:$0xff] }
  0x20   :  { %183 = vmatpush.msra.mxu2 %v172_v22  ;;  %v229_v38 = vld [vmem:[%s436_s4] ss:$0 sm:$0xff] }
  0x21   :  { %145 = vmatpush.msra.mxu1 %v128_v9  ;;  %v230_v42 = vld [vmem:[%s438_s6] ss:$0 sm:$0xff] }
  0x22   :  { %184 = vmatpush.msra.mxu2 %v171_v23 }
  0x23   :  { %146 = vmatpush.msra.mxu1 %v127_v10 }
  0x24   :  { %185 = vmatpush.msra.mxu2 %v170_v24 }
  0x25   :  { %147 = vmatpush.msra.mxu1 %v126_v11 }
  0x26   :  { %186 = vmatpush.msra.mxu2 %v169_v25 }
  0x27   :  { %148 = vmatpush.msra.mxu1 %v125_v12 }
  0x28   :  { %187 = vmatpush.msra.mxu2 %v168_v26 }
  0x29   :  { %149 = vmatpush.msra.mxu1 %v124_v13 }
  0x2a   :  { %188 = vmatpush.msra.mxu2 %v167_v27 }
  0x2b   :  { %150 = vmatpush.msra.mxu1 %v123_v14 }
  0x2c   :  { %189 = vmatpush.msra.mxu2 %v166_v28 }
  0x2d   :  { %151 = vmatpush.msra.mxu1 %v122_v15 }
  0x2e   :  { %190 = vmatpush.msra.mxu2 %v165_v29 }
  0x2f   :  { %152 = vmatpush.msra.mxu1 %v121_v16 }
  0x30   :  { %191 = vmatpush.msra.mxu2 %v164_v33 }
  0x31   :  { %153 = vmatpush.msra.mxu1 %v120_v17 }
  0x32   :  { %192 = vmatpush.msra.mxu2 %v163_v34 }
  0x33   :  { %154 = vmatpush.msra.mxu1 %v119_v18 }
  0x34   :  { %193 = vmatpush.msra.mxu2 %v162_v35 }
  0x36   :  { %194 = vmatpush.msra.mxu2 %v161_v36 }
  0x38   :  { %195 = vmatpush.msra.mxu2 %v160_v37 }
  0x94   :  { %v116_v31 = vpop.f32.mrf.mxu0 }
  0x95   :  { %v117_v32 = vadd.f32 %v228_v30, %v116_v31 }
  0x97   :  { %155 = vmatmul.f32.vlgmr.msra.gmra.mxu1 %v117_v32 }
 0x114   :  { %v156_v39 = vpop.f32.mrf.mxu1 }
 0x115   :  { %v157_v40 = vadd.f32 %v229_v38, %v156_v39 }
 0x117   :  { %231 = vtanh.f32 %v157_v40 }
 0x11d   :  { %v232_v41 = vpop.eup %231 }
 0x11e   :  { %196 = vmatmul.f32.vlgmr.msra.gmra.mxu2 %v232_v41 }
 0x1a1   :  { %v197_v43 = vpop.f32.mrf.mxu2 }
 0x1a2   :  { %v198_v44 = vadd.f32 %v230_v42, %v197_v43 }
 0x1a4   :  { %200 = vst [vmem:[#allocation10] sm:$0xff] %v198_v44 }
 0x1a5   :  { %211 = dma.vmem_to_hbm [thread:$0]  %s207_s25, 128, %s209_s28, [#allocation4]  }
 0x1a6   :  { %359 = dma.done.wait [#allocation4], 128  }
 0x1a7   :  { %360 = vsyncadd [#allocation4], 4294967168 }
 0x1a8   :  { %216 = vsyncpa [#allocation3], 1 }
 0x1a9   :  { %217 = vsyncpa [#allocation6], 1 }
 0x1aa   :  { %218 = vsyncpa [#allocation9], 1 }
 0x1ab   :  { %219 = vsyncpa [#allocation4], 1 }

</bundles_post_ra>
